<compile_context>
chip_gen: v5e
topology: v5e:2x2
jax: 0.10.0
libtpu: 0.0.40
codegen_flags: <defaults>
</compile_context>

<pallas_src>
import functools

import jax
import jax.numpy as jnp
from jax.experimental import pallas as pl
from jax.experimental.pallas import tpu as pltpu


def _round_up(x, m):
    return ((x + m - 1) // m) * m


def _pad2d(a, shape):
    return jnp.pad(a, [(0, shape[0] - a.shape[0]), (0, shape[1] - a.shape[1])])


def gcn_layer_kernel(a_ref, x_ref, w_ref, b_ref, out_ref, *, activation,
                     num_classes):
    """One GCNConv layer on a row tile of A_norm.

    out_tile = act( A_tile @ (X @ W) + b )
    """
    # Feature transform first (FLOP-optimal ordering): bf16 MXU, f32 accum.
    xw = jnp.dot(x_ref[...], w_ref[...],
                 preferred_element_type=jnp.float32)          # (N, Hp) f32
    # Aggregation for this row tile: (TM, N) @ (N, Hp) -> f32.
    z = jnp.dot(a_ref[...], xw.astype(jnp.bfloat16),
                preferred_element_type=jnp.float32)
    z = z + b_ref[...]                                        # f32 bias

    if activation == "relu":
        out_ref[...] = jnp.maximum(z, 0.0).astype(out_ref.dtype)
    else:
        # Masked log_softmax over the lane-padded class dim (pad lanes -> -1e30
        # so they contribute 0 to the sum-exp and never win the max).
        col = jax.lax.broadcasted_iota(jnp.int32, z.shape, 1)
        z = jnp.where(col < num_classes, z, -1e30)
        m = jnp.max(z, axis=1, keepdims=True)
        lse = m + jnp.log(jnp.sum(jnp.exp(z - m), axis=1, keepdims=True))
        out_ref[...] = (z - lse).astype(out_ref.dtype)


def _gcn_layer(a16, x16, w16, b32, *, activation, num_classes, out_dtype, tm):
    n = a16.shape[0]
    f_pad = x16.shape[1]
    h_pad = w16.shape[1]
    grid = (n // tm,)

    flops = 2 * n * f_pad * h_pad * grid[0] + 2 * n * n * h_pad
    transcendentals = n * h_pad if activation == "log_softmax" else 0
    bytes_accessed = (a16.size * 2 + x16.size * 2 + w16.size * 2 +
                      b32.size * 4 + n * h_pad * jnp.dtype(out_dtype).itemsize)

    kernel = functools.partial(gcn_layer_kernel, activation=activation,
                               num_classes=num_classes)
    return pl.pallas_call(
        kernel,
        out_shape=jax.ShapeDtypeStruct((n, h_pad), out_dtype),
        grid_spec=pltpu.PrefetchScalarGridSpec(
            num_scalar_prefetch=0,
            grid=grid,
            in_specs=[
                # A_norm row tile: streamed, double-buffered by the pipeline.
                pl.BlockSpec((tm, n), lambda i: (i, 0)),
                # X / W / b: fully resident across the grid.
                pl.BlockSpec((n, f_pad), lambda i: (0, 0)),
                pl.BlockSpec((f_pad, h_pad), lambda i: (0, 0)),
                pl.BlockSpec((1, h_pad), lambda i: (0, 0)),
            ],
            out_specs=pl.BlockSpec((tm, h_pad), lambda i: (i, 0)),
        ),
        compiler_params=pltpu.CompilerParams(
            # Row tiles are independent -> shard across both v7x TensorCores.
            dimension_semantics=("parallel",)),
        cost_estimate=pl.CostEstimate(flops=flops,
                                      transcendentals=transcendentals,
                                      bytes_accessed=bytes_accessed),
    )(a16, x16, w16, b32)


def gcn_forward(a_norm, x, w1, b1, w2, b2, *, tm=None):
    n, f = x.shape
    c = w2.shape[1]
    assert a_norm.shape == (n, n)

    if tm is None:
        # TM=256 feeds the 256x256 MXU on v6e/v7x at larger N; 128 matches the
        # v5e MXU and this demo size.  Must divide N.
        tm = 256 if (n % 256 == 0 and n >= 512) else (128 if n % 128 == 0 else n)

    f_pad = _round_up(f, 128)
    h_pad = _round_up(w1.shape[1], 128)
    c_pad = _round_up(c, 128)

    # bf16 MXU operands (f32 accumulation in-kernel); zero padding keeps the
    # math exact (zero feature/hidden columns are inert through ReLU and W2).
    a16 = a_norm.astype(jnp.bfloat16)
    x16 = _pad2d(x, (n, f_pad)).astype(jnp.bfloat16)
    w1p = _pad2d(w1, (f_pad, h_pad)).astype(jnp.bfloat16)
    b1p = _pad2d(b1.reshape(1, -1), (1, h_pad)).astype(jnp.float32)
    w2p = _pad2d(w2, (h_pad, c_pad)).astype(jnp.bfloat16)
    b2p = _pad2d(b2.reshape(1, -1), (1, c_pad)).astype(jnp.float32)

    # Layer 1 (ReLU) -> lane-dense bf16 hidden; layer 2 -> lane-dense f32 slab.
    h_act = _gcn_layer(a16, x16, w1p, b1p, activation="relu",
                       num_classes=None, out_dtype=jnp.bfloat16, tm=tm)
    out = _gcn_layer(a16, h_act, w2p, b2p, activation="log_softmax",
                     num_classes=c, out_dtype=jnp.float32, tm=tm)
    return out[:, :c]


def build_normalized_adjacency(edge_index, num_nodes):
    """Dense D^{-1/2} (A + I) D^{-1/2} from a (2, E) edge_index (src, dst)."""
    src, dst = edge_index[0], edge_index[1]
    a = jnp.zeros((num_nodes, num_nodes), jnp.float32)
    a = a.at[dst, src].set(1.0)                      # message flows src -> dst
    a = a + jnp.eye(num_nodes, dtype=jnp.float32)    # self loops
    deg = jnp.sum(a, axis=1)
    dinv = jnp.where(deg > 0, jax.lax.rsqrt(deg), 0.0)
    return a * dinv[:, None] * dinv[None, :]


def ref_bf16_forward(a_norm, x, w1, b1, w2, b2):
    """Pure-JAX reference with the same bf16/f32 precision path as the kernel."""
    a16 = a_norm.astype(jnp.bfloat16)
    xw = jnp.dot(x.astype(jnp.bfloat16), w1.astype(jnp.bfloat16),
                 preferred_element_type=jnp.float32)
    h = jnp.dot(a16, xw.astype(jnp.bfloat16),
                preferred_element_type=jnp.float32) + b1
    h = jnp.maximum(h, 0.0).astype(jnp.bfloat16)
    hw = jnp.dot(h, w2.astype(jnp.bfloat16), preferred_element_type=jnp.float32)
    z = jnp.dot(a16, hw.astype(jnp.bfloat16),
                preferred_element_type=jnp.float32) + b2
    return jax.nn.log_softmax(z, axis=1)


if __name__ == "__main__":
    key = jax.random.PRNGKey(0)

    N = 128                 # number of nodes
    F_IN = 32               # num_node_features
    HIDDEN = 16             # GCNConv(num_node_features, 16)
    NUM_CLASSES = 8         # GCNConv(16, num_classes)
    NUM_EDGES = 256

    k_x, k_e, k_w1, k_w2 = jax.random.split(key, 4)

    # Node features.
    x = jax.random.normal(k_x, (N, F_IN), dtype=jnp.float32)

    # Random undirected edge list (2, E*2): both directions of each edge.
    e = jax.random.randint(k_e, (2, NUM_EDGES), 0, N, dtype=jnp.int32)
    edge_index = jnp.concatenate([e, e[::-1]], axis=1)

    a_norm = build_normalized_adjacency(edge_index, N)

    # Deterministic Glorot-uniform weights + zero biases (GCNConv defaults).
    def glorot(k, shape):
        limit = (6.0 / (shape[0] + shape[1])) ** 0.5
        return jax.random.uniform(k, shape, jnp.float32, -limit, limit)

    w1 = glorot(k_w1, (F_IN, HIDDEN))
    b1 = jnp.zeros((1, HIDDEN), jnp.float32)
    w2 = glorot(k_w2, (HIDDEN, NUM_CLASSES))
    b2 = jnp.zeros((1, NUM_CLASSES), jnp.float32)

    out = gcn_forward(a_norm, x, w1, b1, w2, b2)
    out = jax.block_until_ready(out)
    assert out.shape == (N, NUM_CLASSES)

    # Precision-matched reference (same bf16 operand / f32 accumulation path).
    ref_bf16 = ref_bf16_forward(a_norm, x, w1, b1, w2, b2)
    assert jnp.max(jnp.abs(out - ref_bf16)) < 2e-3

    # Loose check against the full-f32 reference (bf16 operands => ~1e-2 tol).
    h_ref = jnp.maximum(a_norm @ (x @ w1) + b1, 0.0)
    z_ref = a_norm @ (h_ref @ w2) + b2
    ref_f32 = jax.nn.log_softmax(z_ref, axis=1)
    assert jnp.max(jnp.abs(out - ref_f32)) < 5e-2

    print("KERNEL_OK")
</pallas_src>

<mosaic_0001>
module attributes {stable_mosaic.version = 11 : i64} {
  func.func @gcn_layer_kernel(%arg0: i32, %arg1: memref<128x128xbf16, #tpu.memory_space<vmem>>, %arg2: memref<128x128xbf16, #tpu.memory_space<vmem>>, %arg3: memref<128x128xbf16, #tpu.memory_space<vmem>>, %arg4: memref<1x128xf32, #tpu.memory_space<vmem>>, %arg5: memref<128x128xbf16, #tpu.memory_space<vmem>>) attributes {dimension_semantics = [#tpu.dimension_semantics<parallel>], iteration_bounds = array<i64: 1>, scalar_prefetch = 0 : i64, scratch_operands = 0 : i64, tpu.core_type = #tpu.core_type<tc>, window_params = [{transform_indices = @transform_0, window_bounds = array<i64: 128, 128>}, {pipeline_mode = #tpu.pipeline_mode<synchronous>, transform_indices = @transform_1, window_bounds = array<i64: 128, 128>}, {pipeline_mode = #tpu.pipeline_mode<synchronous>, transform_indices = @transform_2, window_bounds = array<i64: 128, 128>}, {pipeline_mode = #tpu.pipeline_mode<synchronous>, transform_indices = @transform_3, window_bounds = array<i64: 1, 128>}, {transform_indices = @transform_4, window_bounds = array<i64: 128, 128>}]} {
    %c0 = arith.constant 0 : index
    %c0_0 = arith.constant 0 : index
    %0 = vector.load %arg2[%c0, %c0_0] : memref<128x128xbf16, #tpu.memory_space<vmem>>, vector<128x128xbf16>
    %c0_1 = arith.constant 0 : index
    %c0_2 = arith.constant 0 : index
    %1 = vector.load %arg3[%c0_1, %c0_2] : memref<128x128xbf16, #tpu.memory_space<vmem>>, vector<128x128xbf16>
    %cst = arith.constant dense<0.000000e+00> : vector<128x128xf32>
    %2 = tpu.matmul %0, %1, %cst {dimension_numbers = #tpu.dot_dimension_numbers<[1], [0], [0], [1], [0, 0, 1, 1], [], []>} : vector<128x128xbf16>, vector<128x128xbf16>, vector<128x128xf32> -> vector<128x128xf32>
    %c0_3 = arith.constant 0 : index
    %c0_4 = arith.constant 0 : index
    %3 = vector.load %arg1[%c0_3, %c0_4] : memref<128x128xbf16, #tpu.memory_space<vmem>>, vector<128x128xbf16>
    %4 = arith.truncf %2 : vector<128x128xf32> to vector<128x128xbf16>
    %cst_5 = arith.constant dense<0.000000e+00> : vector<128x128xf32>
    %5 = tpu.matmul %3, %4, %cst_5 {dimension_numbers = #tpu.dot_dimension_numbers<[1], [0], [0], [1], [0, 0, 1, 1], [], []>} : vector<128x128xbf16>, vector<128x128xbf16>, vector<128x128xf32> -> vector<128x128xf32>
    %c0_6 = arith.constant 0 : index
    %c0_7 = arith.constant 0 : index
    %6 = vector.load %arg4[%c0_6, %c0_7] : memref<1x128xf32, #tpu.memory_space<vmem>>, vector<1x128xf32>
    %7 = vector.broadcast %6 : vector<1x128xf32> to vector<128x128xf32>
    %8 = arith.addf %5, %7 : vector<128x128xf32>
    %cst_8 = arith.constant 0.000000e+00 : f32
    %9 = vector.broadcast %cst_8 : f32 to vector<128x128xf32>
    %10 = arith.maximumf %8, %9 : vector<128x128xf32>
    %11 = arith.truncf %10 : vector<128x128xf32> to vector<128x128xbf16>
    %c0_9 = arith.constant 0 : index
    %c0_10 = arith.constant 0 : index
    %12 = vector.load %arg5[%c0_9, %c0_10] : memref<128x128xbf16, #tpu.memory_space<vmem>>, vector<128x128xbf16>
    tpu.vector_store %arg5[%c0_9, %c0_10], %11 {strides = array<i32>} : memref<128x128xbf16, #tpu.memory_space<vmem>>, vector<128x128xbf16>,
    return
  }
  func.func @transform_0(%arg0: i32) -> (i32, i32) {
    %c0_i32 = arith.constant 0 : i32
    %c0_i32_0 = arith.constant 0 : i32
    return %arg0, %c0_i32 : i32, i32
  }
  func.func @transform_1(%arg0: i32) -> (i32, i32) {
    %c0_i32 = arith.constant 0 : i32
    %c0_i32_0 = arith.constant 0 : i32
    %c0_i32_1 = arith.constant 0 : i32
    return %c0_i32, %c0_i32_0 : i32, i32
  }
  func.func @transform_2(%arg0: i32) -> (i32, i32) {
    %c0_i32 = arith.constant 0 : i32
    %c0_i32_0 = arith.constant 0 : i32
    %c0_i32_1 = arith.constant 0 : i32
    return %c0_i32, %c0_i32_0 : i32, i32
  }
  func.func @transform_3(%arg0: i32) -> (i32, i32) {
    %c0_i32 = arith.constant 0 : i32
    %c0_i32_0 = arith.constant 0 : i32
    %c0_i32_1 = arith.constant 0 : i32
    return %c0_i32, %c0_i32_0 : i32, i32
  }
  func.func @transform_4(%arg0: i32) -> (i32, i32) {
    %c0_i32 = arith.constant 0 : i32
    %c0_i32_0 = arith.constant 0 : i32
    return %arg0, %c0_i32 : i32, i32
  }
}

</mosaic_0001>

<bundles_post_ra>
// kernel: tpu_custom_call.1
= control target key start
LH: loop header
LB: loop body
LE: loop exit
PB: predicated region body
PF: predicated region fallthrough
CT: control target
= control target key end

     0   :  { %9 = vsyncpa [#allocation3], 0  ;;  %s785_s0 = inlined_call_operand.hbm [shape: bf16[128,128], index: 0, kind: input, shape index: {}]   ;;  %s786_s1 = inlined_call_operand.hbm [shape: bf16[128,128], index: 1, kind: input, shape index: {}]   ;;  %s787_s2 = inlined_call_operand.hbm [shape: bf16[128,128], index: 2, kind: input, shape index: {}]   ;;  %s788_s3 = inlined_call_operand.vmem [shape: f32[1,128], index: 3, kind: input, shape index: {}]   ;;  %s789_s4 = inlined_call_operand.hbm [shape: bf16[128,128], index: 4, kind: output, shape index: {}]  }
   0x1   :  { %10 = vsyncpa [#allocation6], 0 }
   0x2   :  { %11 = vsyncpa [#allocation4], 0  ;;  %s29_s17 = sshll.u32 %s786_s1, 4  ;;  %s727_s18 = smov [#allocation5]   ;;  %s30_s17 = int_to_ptr.hbm [resolvable:$true] %s29_s17 }
   0x3   :  { %s31_s19 = sshll.u32 %s727_s18, 4  ;;  %s16_s22 = sshll.u32 %s785_s0, 4  ;;  %s32_s19 = int_to_ptr.vmem [resolvable:$true] %s31_s19  ;;  %s17_s22 = int_to_ptr.hbm [resolvable:$true] %s16_s22 }
   0x4   :  { %s728_s23 = smov 64   ;;  %s729_s24 = smov 4  }
   0x5   :  { %37 = dma.hbm_to_vmem [thread:$0]  %s30_s17, 1024, %s32_s19, [#allocation6], %s728_s23, %s728_s23, %s729_s24  }
   0x6   :  { %s730_s25 = smov [#allocation2]   ;;  %s42_s1 = sshll.u32 %s787_s2, 4  ;;  %s43_s1 = int_to_ptr.hbm [resolvable:$true] %s42_s1 }
   0x7   :  { %s18_s26 = sshll.u32 %s730_s25, 4  ;;  %s731_s0 = smov [#allocation7]   ;;  %s19_s26 = int_to_ptr.vmem [resolvable:$true] %s18_s26 }
   0x8   :  { %24 = dma.hbm_to_vmem [thread:$0]  %s17_s22, 1024, %s19_s26, [#allocation3], %s728_s23, %s728_s23, %s729_s24  }
   0x9   :  { %s44_s29 = sshll.u32 %s731_s0, 4  ;;  %s45_s29 = int_to_ptr.vmem [resolvable:$true] %s44_s29 }
   0xa   :  { %50 = dma.hbm_to_vmem [thread:$0]  %s43_s1, 1024, %s45_s29, [#allocation6], %s728_s23, %s728_s23, %s729_s24  }
   0xb   :  { %721 = dma.done.wait [#allocation3], 1024  }
   0xc   :  { %722 = vsyncadd [#allocation3], 4294966272 }
   0xd   :  { %723 = dma.done.wait [#allocation6], 2048  }
   0xe   :  { %724 = vsyncadd [#allocation6], 4294965248  ;;  %v546_v0 = vld [vmem:[#allocation7 + $0x38] sm:$0xff]  ;;  %v545_v1 = vld [vmem:[#allocation7 + $0x30] sm:$0xff]  ;;  %s421_s8 = sshll.u32 %s789_s4, 4  ;;  %s422_s8 = int_to_ptr.hbm [resolvable:$true] %s421_s8 }
   0xf   :  { %602 = vmatpush.bf16.msra.mxu2 %v546_v0  ;;  %193 = vmatpush.bf16.msra.mxu0 %v546_v0  ;;  %v544_v2 = vld [vmem:[#allocation7 + $0x28] sm:$0xff]  ;;  %v543_v3 = vld [vmem:[#allocation7 + $0x20] sm:$0xff]  ;;  %v542_v4 = vld [vmem:[#allocation7 + $0x18] sm:$0xff] }
  0x10   :  { %v541_v5 = vld [vmem:[#allocation7 + $0x10] sm:$0xff]  ;;  %v540_v6 = vld [vmem:[#allocation7 + $0x8] sm:$0xff]  ;;  %v539_v7 = vld [vmem:[#allocation7] sm:$0xff] }
  0x11   :  { %v535_v8 = vld [vmem:[#allocation5 + $0x20] sm:$0xff]  ;;  %v536_v10 = vld [vmem:[#allocation5 + $0x28] sm:$0xff]  ;;  %v537_v12 = vld [vmem:[#allocation5 + $0x30] sm:$0xff] }
  0x12   :  { %v531_v9 = vld [vmem:[#allocation5] sm:$0xff]  ;;  %v532_v11 = vld [vmem:[#allocation5 + $0x8] sm:$0xff]  ;;  %v533_v13 = vld [vmem:[#allocation5 + $0x10] sm:$0xff] }
  0x13   :  { %603 = vmatpush.bf16.msra.mxu2 %v545_v1  ;;  %194 = vmatpush.bf16.msra.mxu0 %v545_v1  ;;  %v538_v14 = vld [vmem:[#allocation5 + $0x38] sm:$0xff]  ;;  %v547_v40 = vld [vmem:[#allocation2] sm:$0xff]  ;;  %v548_v42 = vld [vmem:[#allocation2 + $0x8] sm:$0xff] }
  0x14   :  { %v534_v15 = vld [vmem:[#allocation5 + $0x18] sm:$0xff]  ;;  %v551_v41 = vld [vmem:[#allocation2 + $0x20] sm:$0xff]  ;;  %v552_v43 = vld [vmem:[#allocation2 + $0x28] sm:$0xff] }
  0x15   :  { %v549_v44 = vld [vmem:[#allocation2 + $0x10] sm:$0xff]  ;;  %v550_v46 = vld [vmem:[#allocation2 + $0x18] sm:$0xff]  ;;  %v624_v49 = vld [vmem:[%s788_s3] ss:$0 sm:$0xff]  ;;  %s732_s3 = smov [#allocation8]  }
  0x16   :  { %v553_v45 = vld [vmem:[#allocation2 + $0x30] sm:$0xff]  ;;  %v554_v47 = vld [vmem:[#allocation2 + $0x38] sm:$0xff]  ;;  %s419_s5 = sshll.u32 %s732_s3, 4  ;;  %s420_s5 = int_to_ptr.vmem [resolvable:$true] %s419_s5 }
  0x17   :  { %604 = vmatpush.bf16.msra.mxu2 %v544_v2  ;;  %195 = vmatpush.bf16.msra.mxu0 %v544_v2 }
  0x1b   :  { %605 = vmatpush.bf16.msra.mxu2 %v543_v3  ;;  %196 = vmatpush.bf16.msra.mxu0 %v543_v3 }
  0x1f   :  { %606 = vmatpush.bf16.msra.mxu2 %v542_v4  ;;  %197 = vmatpush.bf16.msra.mxu0 %v542_v4 }
  0x23   :  { %607 = vmatpush.bf16.msra.mxu2 %v541_v5  ;;  %198 = vmatpush.bf16.msra.mxu0 %v541_v5 }
  0x27   :  { %608 = vmatpush.bf16.msra.mxu2 %v540_v6  ;;  %199 = vmatpush.bf16.msra.mxu0 %v540_v6 }
  0x2b   :  { %609 = vmatpush.bf16.msra.mxu2 %v539_v7  ;;  %200 = vmatpush.bf16.msra.mxu0 %v539_v7 }
  0x2e   :  { %221 = vmatmul.bf16.vlgmr.msra.gmra.mxu2 %v535_v8  ;;  %201 = vmatmul.bf16.vlgmr.msra.gmra.mxu0 %v531_v9 }
  0x3e   :  { %226 = vmatmul.bf16.gmra.mxu2 %v536_v10  ;;  %206 = vmatmul.bf16.gmra.mxu0 %v532_v11 }
  0x4e   :  { %231 = vmatmul.bf16.gmra.mxu2 %v537_v12  ;;  %211 = vmatmul.bf16.gmra.mxu0 %v533_v13 }
  0x5e   :  { %236 = vmatmul.bf16.gmra.mxu2 %v538_v14  ;;  %216 = vmatmul.bf16.gmra.mxu0 %v534_v15 }
  0xab   :  { %v202_v17 = vpop.f32.mrf.mxu0 }
  0xb1   :  { %v222_v16 = vpop.f32.mrf.mxu2 }
  0xb3   :  { %v204_v19 = vpop.f32.mrf.mxu0 }
  0xb4   :  { %v258_v39 = vpack.c.bf16 %v204_v19, %v202_v17 }
  0xb9   :  { %v224_v18 = vpop.f32.mrf.mxu2 }
  0xba   :  { %v262_v34 = vpack.c.bf16 %v224_v18, %v222_v16 }
  0xbb   :  { %v207_v21 = vpop.f32.mrf.mxu0 }
  0xc1   :  { %v227_v20 = vpop.f32.mrf.mxu2 }
  0xc3   :  { %v209_v23 = vpop.f32.mrf.mxu0 }
  0xc4   :  { %v259_v38 = vpack.c.bf16 %v209_v23, %v207_v21 }
  0xc9   :  { %v229_v22 = vpop.f32.mrf.mxu2 }
  0xca   :  { %v263_v33 = vpack.c.bf16 %v229_v22, %v227_v20 }
  0xcb   :  { %v212_v25 = vpop.f32.mrf.mxu0 }
  0xd1   :  { %v232_v24 = vpop.f32.mrf.mxu2 }
  0xd3   :  { %v214_v28 = vpop.f32.mrf.mxu0 }
  0xd4   :  { %v260_v37 = vpack.c.bf16 %v214_v28, %v212_v25 }
  0xd9   :  { %v234_v26 = vpop.f32.mrf.mxu2 }
  0xda   :  { %v264_v32 = vpack.c.bf16 %v234_v26, %v232_v24 }
  0xdb   :  { %v217_v31 = vpop.f32.mrf.mxu0 }
  0xe1   :  { %v237_v27 = vpop.f32.mrf.mxu2 }
  0xe3   :  { %v219_v35 = vpop.f32.mrf.mxu0 }
  0xe4   :  { %v261_v36 = vpack.c.bf16 %v219_v35, %v217_v31 }
  0xe9   :  { %v239_v29 = vpop.f32.mrf.mxu2 }
  0xea   :  { %v265_v30 = vpack.c.bf16 %v239_v29, %v237_v27 }
  0xec   :  { %318 = vmatpush.bf16.msra.mxu1 %v265_v30  ;;  %610 = vmatpush.bf16.msra.mxu3 %v265_v30 }
  0xf0   :  { %319 = vmatpush.bf16.msra.mxu1 %v264_v32  ;;  %611 = vmatpush.bf16.msra.mxu3 %v264_v32 }
  0xf4   :  { %320 = vmatpush.bf16.msra.mxu1 %v263_v33  ;;  %612 = vmatpush.bf16.msra.mxu3 %v263_v33 }
  0xf8   :  { %321 = vmatpush.bf16.msra.mxu1 %v262_v34  ;;  %613 = vmatpush.bf16.msra.mxu3 %v262_v34 }
  0xfc   :  { %322 = vmatpush.bf16.msra.mxu1 %v261_v36  ;;  %614 = vmatpush.bf16.msra.mxu3 %v261_v36 }
 0x100   :  { %323 = vmatpush.bf16.msra.mxu1 %v260_v37  ;;  %615 = vmatpush.bf16.msra.mxu3 %v260_v37 }
 0x104   :  { %324 = vmatpush.bf16.msra.mxu1 %v259_v38  ;;  %616 = vmatpush.bf16.msra.mxu3 %v259_v38 }
 0x108   :  { %325 = vmatpush.bf16.msra.mxu1 %v258_v39  ;;  %617 = vmatpush.bf16.msra.mxu3 %v258_v39 }
 0x10b   :  { %326 = vmatmul.bf16.vlgmr.msra.gmra.mxu1 %v547_v40  ;;  %346 = vmatmul.bf16.vlgmr.msra.gmra.mxu3 %v551_v41 }
 0x11b   :  { %331 = vmatmul.bf16.gmra.mxu1 %v548_v42  ;;  %351 = vmatmul.bf16.gmra.mxu3 %v552_v43 }
 0x12b   :  { %336 = vmatmul.bf16.gmra.mxu1 %v549_v44  ;;  %356 = vmatmul.bf16.gmra.mxu3 %v553_v45 }
 0x13b   :  { %341 = vmatmul.bf16.gmra.mxu1 %v550_v46  ;;  %361 = vmatmul.bf16.gmra.mxu3 %v554_v47 }
 0x188   :  { %v327_v48 = vpop.f32.mrf.mxu1 }
 0x189   :  { %v328_v51 = vadd.f32 %v624_v49, %v327_v48 }
 0x18b   :  { %v367_v54 = vmax.f32 %v328_v51, 0.0 }
 0x18e   :  { %v347_v50 = vpop.f32.mrf.mxu3 }
 0x18f   :  { %v348_v56 = vadd.f32 %v624_v49, %v347_v50 }
 0x190   :  { %v329_v52 = vpop.f32.mrf.mxu1 }
 0x191   :  { %v330_v53 = vadd.f32 %v624_v49, %v329_v52  ;;  %v375_v61 = vmax.f32 %v348_v56, 0.0 }
 0x193   :  { %v368_v55 = vmax.f32 %v330_v53, 0.0 }
 0x195   :  { %v558_v57 = vpack.c.bf16 %v368_v55, %v367_v54 }
 0x196   :  { %v349_v58 = vpop.f32.mrf.mxu3 }
 0x197   :  { %559 = vst [vmem:[#allocation8] sm:$0xff] %v558_v57   ;;  %v350_v59 = vadd.f32 %v624_v49, %v349_v58 }
 0x198   :  { %v332_v60 = vpop.f32.mrf.mxu1 }
 0x199   :  { %v376_v62 = vmax.f32 %v350_v59, 0.0  ;;  %v333_v1 = vadd.f32 %v624_v49, %v332_v60 }
 0x19b   :  { %v578_v63 = vpack.c.bf16 %v376_v62, %v375_v61  ;;  %v369_v4 = vmax.f32 %v333_v1, 0.0 }
 0x19d   :  { %598 = vst [vmem:[#allocation8 + $0x20] sm:$0xff] %v578_v63  }
 0x19e   :  { %v352_v0 = vpop.f32.mrf.mxu3 }
 0x19f   :  { %v353_v6 = vadd.f32 %v624_v49, %v352_v0 }
 0x1a0   :  { %v334_v2 = vpop.f32.mrf.mxu1 }
 0x1a1   :  { %v335_v3 = vadd.f32 %v624_v49, %v334_v2  ;;  %v377_v11 = vmax.f32 %v353_v6, 0.0 }
 0x1a3   :  { %v370_v5 = vmax.f32 %v335_v3, 0.0 }
 0x1a5   :  { %v563_v7 = vpack.c.bf16 %v370_v5, %v369_v4 }
 0x1a6   :  { %v354_v8 = vpop.f32.mrf.mxu3 }
 0x1a7   :  { %595 = vst [vmem:[#allocation8 + $0x8] sm:$0xff] %v563_v7   ;;  %v355_v9 = vadd.f32 %v624_v49, %v354_v8 }
 0x1a8   :  { %v337_v10 = vpop.f32.mrf.mxu1 }
 0x1a9   :  { %v378_v12 = vmax.f32 %v355_v9, 0.0  ;;  %v338_v15 = vadd.f32 %v624_v49, %v337_v10 }
 0x1ab   :  { %v583_v13 = vpack.c.bf16 %v378_v12, %v377_v11  ;;  %v371_v18 = vmax.f32 %v338_v15, 0.0 }
 0x1ad   :  { %599 = vst [vmem:[#allocation8 + $0x28] sm:$0xff] %v583_v13  }
 0x1ae   :  { %v357_v14 = vpop.f32.mrf.mxu3 }
 0x1af   :  { %v358_v20 = vadd.f32 %v624_v49, %v357_v14 }
 0x1b0   :  { %v339_v16 = vpop.f32.mrf.mxu1 }
 0x1b1   :  { %v340_v17 = vadd.f32 %v624_v49, %v339_v16  ;;  %v379_v25 = vmax.f32 %v358_v20, 0.0 }
 0x1b3   :  { %v372_v19 = vmax.f32 %v340_v17, 0.0 }
 0x1b5   :  { %v568_v21 = vpack.c.bf16 %v372_v19, %v371_v18 }
 0x1b6   :  { %v359_v22 = vpop.f32.mrf.mxu3 }
 0x1b7   :  { %596 = vst [vmem:[#allocation8 + $0x10] sm:$0xff] %v568_v21   ;;  %v360_v23 = vadd.f32 %v624_v49, %v359_v22 }
 0x1b8   :  { %v342_v24 = vpop.f32.mrf.mxu1 }
 0x1b9   :  { %v380_v26 = vmax.f32 %v360_v23, 0.0  ;;  %v343_v29 = vadd.f32 %v624_v49, %v342_v24 }
 0x1bb   :  { %v588_v27 = vpack.c.bf16 %v380_v26, %v379_v25  ;;  %v373_v32 = vmax.f32 %v343_v29, 0.0 }
 0x1bd   :  { %600 = vst [vmem:[#allocation8 + $0x30] sm:$0xff] %v588_v27  }
 0x1be   :  { %v362_v28 = vpop.f32.mrf.mxu3 }
 0x1bf   :  { %v363_v34 = vadd.f32 %v624_v49, %v362_v28 }
 0x1c0   :  { %v344_v30 = vpop.f32.mrf.mxu1 }
 0x1c1   :  { %v345_v31 = vadd.f32 %v624_v49, %v344_v30  ;;  %v381_v38 = vmax.f32 %v363_v34, 0.0 }
 0x1c3   :  { %v374_v33 = vmax.f32 %v345_v31, 0.0 }
 0x1c5   :  { %v573_v35 = vpack.c.bf16 %v374_v33, %v373_v32 }
 0x1c6   :  { %v364_v36 = vpop.f32.mrf.mxu3 }
 0x1c7   :  { %597 = vst [vmem:[#allocation8 + $0x18] sm:$0xff] %v573_v35   ;;  %v365_v37 = vadd.f32 %v624_v49, %v364_v36 }
 0x1c9   :  { %v382_v39 = vmax.f32 %v365_v37, 0.0 }
 0x1cb   :  { %v593_v40 = vpack.c.bf16 %v382_v39, %v381_v38 }
 0x1cd   :  { %601 = vst [vmem:[#allocation8 + $0x38] sm:$0xff] %v593_v40  }
 0x1ce   :  { %427 = dma.vmem_to_hbm [thread:$0]  %s420_s5, 1024, %s422_s8, [#allocation4], %s728_s23, %s728_s23, %s729_s24  }
 0x1cf   :  { %725 = dma.done.wait [#allocation4], 1024  }
 0x1d0   :  { %726 = vsyncadd [#allocation4], 4294966272 }
 0x1d1   :  { %432 = vsyncpa [#allocation3], 1 }
 0x1d2   :  { %433 = vsyncpa [#allocation6], 1 }
 0x1d3   :  { %434 = vsyncpa [#allocation4], 1 }

</bundles_post_ra>
